<compile_context>
chip_gen: v6e
topology: v6e:2x2x1
jax: 0.10.0
libtpu: 0.0.40
codegen_flags: <defaults>
</compile_context>

<pallas_src>
import functools

import jax
import jax.numpy as jnp
from jax.experimental import pallas as pl
from jax.experimental.pallas import tpu as pltpu

IN_CHANNEL = 125
HIDDEN = 16                # CHANNELS[1]
OUT_POINTS = 6
OUT_DIM = OUT_POINTS * 3   # 18
BN_EPS = 1e-5
TILE_N_MAX = 8192          # ~16 MiB of double-buffered VMEM per pass at f32
VMEM_LIMIT_BYTES = 32 * 1024 * 1024


def _round_up(n, m):
    return (n + m - 1) // m * m


def _pass1_kernel(x_ref, w1_ref, b1_ref, h_ref, stats_ref, *, tile_n, n_rows):
    """h = relu(x @ W1 + b1); emit per-tile partial BN sum / sum-of-squares."""
    i = pl.program_id(0)

    h = jnp.dot(x_ref[...], w1_ref[...], preferred_element_type=jnp.float32)
    h = jnp.maximum(h + b1_ref[...], 0.0)               # (tile_n, 16)
    h_ref[...] = h

    def put_stats(hm):
        stats_ref[0:1, 0:1, :] = jnp.sum(hm, axis=0, keepdims=True)[None]
        stats_ref[0:1, 1:2, :] = jnp.sum(hm * hm, axis=0, keepdims=True)[None]

    last = pl.num_programs(0) - 1

    @pl.when(i != last)
    def _():                                             # full tiles: unmasked
        put_stats(h)

    @pl.when(i == last)
    def _():                                             # ragged tail: mask rows >= n
        row = jax.lax.broadcasted_iota(jnp.int32, h.shape, 0) + i * tile_n
        put_stats(jnp.where(row < n_rows, h, 0.0))


def _pass2_kernel(h_ref, stats_ref, gamma_ref, beta_ref, w2_ref, b2_ref, o_ref,
                  *, inv_n):
    """y = relu(BN(h) @ W2 + b2); stats reduced + BN affine folded in-kernel."""
    stats = jnp.sum(stats_ref[...], axis=0)              # (2, 16) over all tiles
    mean = stats[0:1, :] * inv_n                          # (1, 16)
    var = jnp.maximum(stats[1:2, :] * inv_n - mean * mean, 0.0)   # biased var
    scale = gamma_ref[...] * jax.lax.rsqrt(var + BN_EPS)  # (1, 16)
    shift = beta_ref[...] - mean * scale                  # (1, 16)

    hn = h_ref[...] * scale + shift                       # (tile_n, 16)
    y = jnp.dot(hn, w2_ref[...], preferred_element_type=jnp.float32)
    o_ref[...] = jnp.maximum(y + b2_ref[...], 0.0)


def generative_mlp_4(x, params):
    """x: (N, 125) float32 -> (N, 18) float32."""
    w1, b1, gamma, beta, w2, b2 = params
    n = x.shape[0]

    tile_n = min(TILE_N_MAX, _round_up(n, 8))
    grid_n = pl.cdiv(n, tile_n)
    n_pad = grid_n * tile_n        # internal h intermediate only; x / y unpadded

    def const2d(shape):
        return pl.BlockSpec(shape, lambda i: (0, 0))

    # ---- Pass 1: stream x tiles -> h tiles + per-tile partial BN stats -------
    h, stats = pl.pallas_call(
        functools.partial(_pass1_kernel, tile_n=tile_n, n_rows=n),
        grid=(grid_n,),
        in_specs=[
            pl.BlockSpec((tile_n, IN_CHANNEL), lambda i: (i, 0)),   # streamed x
            const2d((IN_CHANNEL, HIDDEN)),                          # resident W1
            const2d((1, HIDDEN)),                                   # resident b1
        ],
        out_specs=(
            pl.BlockSpec((tile_n, HIDDEN), lambda i: (i, 0)),       # streamed h
            pl.BlockSpec((1, 2, HIDDEN), lambda i: (i, 0, 0)),      # partial stats
        ),
        out_shape=(
            jax.ShapeDtypeStruct((n_pad, HIDDEN), jnp.float32),
            jax.ShapeDtypeStruct((grid_n, 2, HIDDEN), jnp.float32),
        ),
        compiler_params=pltpu.CompilerParams(
            dimension_semantics=("parallel",),
            vmem_limit_bytes=VMEM_LIMIT_BYTES,
        ),
    )(x, w1, b1)

    # ---- Pass 2: stream h tiles -> BN (folded in-kernel) + Linear + ReLU -----
    y = pl.pallas_call(
        functools.partial(_pass2_kernel, inv_n=1.0 / n),
        grid=(grid_n,),
        in_specs=[
            pl.BlockSpec((tile_n, HIDDEN), lambda i: (i, 0)),        # streamed h
            pl.BlockSpec((grid_n, 2, HIDDEN), lambda i: (0, 0, 0)),  # resident stats
            const2d((1, HIDDEN)),                                    # gamma
            const2d((1, HIDDEN)),                                    # beta
            const2d((HIDDEN, OUT_DIM)),                              # W2
            const2d((1, OUT_DIM)),                                   # b2
        ],
        out_specs=pl.BlockSpec((tile_n, OUT_DIM), lambda i: (i, 0)),
        out_shape=jax.ShapeDtypeStruct((n, OUT_DIM), jnp.float32),
        compiler_params=pltpu.CompilerParams(
            dimension_semantics=("parallel",),
            vmem_limit_bytes=VMEM_LIMIT_BYTES,
        ),
    )(h, stats, gamma, beta, w2, b2)

    return y


def init_params(key):
    """PyTorch-style (kaiming-uniform) init for the Linears; BN gamma=1, beta=0."""
    k1, k2, k3, k4 = jax.random.split(key, 4)

    bound1 = 1.0 / jnp.sqrt(IN_CHANNEL)
    w1 = jax.random.uniform(k1, (IN_CHANNEL, HIDDEN), jnp.float32, -bound1, bound1)
    b1 = jax.random.uniform(k2, (1, HIDDEN), jnp.float32, -bound1, bound1)

    gamma = jnp.ones((1, HIDDEN), jnp.float32)
    beta = jnp.zeros((1, HIDDEN), jnp.float32)

    bound2 = 1.0 / jnp.sqrt(HIDDEN)
    w2 = jax.random.uniform(k3, (HIDDEN, OUT_DIM), jnp.float32, -bound2, bound2)
    b2 = jax.random.uniform(k4, (1, OUT_DIM), jnp.float32, -bound2, bound2)

    return (w1, b1, gamma, beta, w2, b2)


def reference_forward(x, params):
    """Pure-JAX reference (same math) for a correctness check."""
    w1, b1, gamma, beta, w2, b2 = params
    h = jnp.maximum(x @ w1 + b1, 0.0)
    mean = jnp.mean(h, axis=0, keepdims=True)
    var = jnp.mean((h - mean) ** 2, axis=0, keepdims=True)
    hn = (h - mean) * jax.lax.rsqrt(var + BN_EPS) * gamma + beta
    return jnp.maximum(hn @ w2 + b2, 0.0)


if __name__ == "__main__":
    key = jax.random.PRNGKey(0)
    kp, kx1, kx2 = jax.random.split(key, 3)

    params = init_params(kp)

    # Small aligned batch (BatchNorm1d in training mode needs N > 1).
    N1 = 64
    x1 = jax.random.normal(kx1, (N1, IN_CHANNEL), dtype=jnp.float32)
    y1 = generative_mlp_4(x1, params)
    jax.block_until_ready(y1)
    y1_ref = reference_forward(x1, params)
    assert y1.shape == (N1, OUT_DIM)
    assert jnp.allclose(y1, y1_ref, atol=1e-4, rtol=1e-3), (
        float(jnp.max(jnp.abs(y1 - y1_ref))))

    # Ragged batch (not a multiple of 8) to exercise the unpadded tail path.
    N2 = 53
    x2 = jax.random.normal(kx2, (N2, IN_CHANNEL), dtype=jnp.float32)
    y2 = generative_mlp_4(x2, params)
    jax.block_until_ready(y2)
    y2_ref = reference_forward(x2, params)
    assert y2.shape == (N2, OUT_DIM)
    assert jnp.allclose(y2, y2_ref, atol=1e-4, rtol=1e-3), (
        float(jnp.max(jnp.abs(y2 - y2_ref))))

    print("KERNEL_OK")
</pallas_src>

<mosaic_0001>
module attributes {stable_mosaic.version = 11 : i64} {
  func.func @_pass1_kernel(%arg0: i32, %arg1: memref<64x125xf32, #tpu.memory_space<vmem>>, %arg2: memref<125x16xf32, #tpu.memory_space<vmem>>, %arg3: memref<1x16xf32, #tpu.memory_space<vmem>>, %arg4: memref<64x16xf32, #tpu.memory_space<vmem>>, %arg5: memref<1x2x16xf32, #tpu.memory_space<vmem>>) attributes {dimension_semantics = [#tpu.dimension_semantics<parallel>], iteration_bounds = array<i64: 1>, scalar_prefetch = 0 : i64, scratch_operands = 0 : i64, tpu.core_type = #tpu.core_type<tc>, window_params = [{transform_indices = @transform_0, window_bounds = array<i64: 64, 125>}, {pipeline_mode = #tpu.pipeline_mode<synchronous>, transform_indices = @transform_1, window_bounds = array<i64: 125, 16>}, {pipeline_mode = #tpu.pipeline_mode<synchronous>, transform_indices = @transform_2, window_bounds = array<i64: 1, 16>}, {transform_indices = @transform_3, window_bounds = array<i64: 64, 16>}, {transform_indices = @transform_4, window_bounds = array<i64: 1, 2, 16>}]} {
    %c0 = arith.constant 0 : index
    %c0_0 = arith.constant 0 : index
    %0 = vector.load %arg1[%c0, %c0_0] : memref<64x125xf32, #tpu.memory_space<vmem>>, vector<64x125xf32>
    %c0_1 = arith.constant 0 : index
    %c0_2 = arith.constant 0 : index
    %1 = vector.load %arg2[%c0_1, %c0_2] : memref<125x16xf32, #tpu.memory_space<vmem>>, vector<125x16xf32>
    %cst = arith.constant dense<0.000000e+00> : vector<64x16xf32>
    %2 = tpu.matmul %0, %1, %cst {dimension_numbers = #tpu.dot_dimension_numbers<[1], [0], [0], [1], [0, 0, 1, 1], [], []>} : vector<64x125xf32>, vector<125x16xf32>, vector<64x16xf32> -> vector<64x16xf32>
    %c0_3 = arith.constant 0 : index
    %c0_4 = arith.constant 0 : index
    %3 = vector.load %arg3[%c0_3, %c0_4] : memref<1x16xf32, #tpu.memory_space<vmem>>, vector<1x16xf32>
    %4 = vector.broadcast %3 : vector<1x16xf32> to vector<64x16xf32>
    %5 = arith.addf %2, %4 : vector<64x16xf32>
    %cst_5 = arith.constant 0.000000e+00 : f32
    %6 = vector.broadcast %cst_5 : f32 to vector<64x16xf32>
    %7 = arith.maximumf %5, %6 : vector<64x16xf32>
    %c0_6 = arith.constant 0 : index
    %c0_7 = arith.constant 0 : index
    %8 = vector.load %arg4[%c0_6, %c0_7] : memref<64x16xf32, #tpu.memory_space<vmem>>, vector<64x16xf32>
    tpu.vector_store %arg4[%c0_6, %c0_7], %7 {strides = array<i32>} : memref<64x16xf32, #tpu.memory_space<vmem>>, vector<64x16xf32>,
    %c0_i32 = arith.constant 0 : i32
    %9 = arith.cmpi ne, %arg0, %c0_i32 : i32
    %10 = arith.extui %9 : i1 to i32
    %c0_i32_8 = arith.constant 0 : i32
    %11 = arith.cmpi ne, %10, %c0_i32_8 : i32
    scf.if %11 {
      %cst_11 = arith.constant dense<0.000000e+00> : vector<16xf32>
      %15 = vector.multi_reduction <add>, %7, %cst_11 [0] : vector<64x16xf32> to vector<16xf32>
      %16 = vector.shape_cast %15 : vector<16xf32> to vector<1x16xf32>
      %17 = vector.shape_cast %16 : vector<1x16xf32> to vector<1x1x16xf32>
      %c0_12 = arith.constant 0 : index
      %c0_13 = arith.constant 0 : index
      %c0_14 = arith.constant 0 : index
      %18 = vector.load %arg5[%c0_12, %c0_13, %c0_14] : memref<1x2x16xf32, #tpu.memory_space<vmem>>, vector<1x1x16xf32>
      tpu.vector_store %arg5[%c0_12, %c0_13, %c0_14], %17 {strides = array<i32>} : memref<1x2x16xf32, #tpu.memory_space<vmem>>, vector<1x1x16xf32>,
      %19 = arith.mulf %7, %7 : vector<64x16xf32>
      %cst_15 = arith.constant dense<0.000000e+00> : vector<16xf32>
      %20 = vector.multi_reduction <add>, %19, %cst_15 [0] : vector<64x16xf32> to vector<16xf32>
      %21 = vector.shape_cast %20 : vector<16xf32> to vector<1x16xf32>
      %22 = vector.shape_cast %21 : vector<1x16xf32> to vector<1x1x16xf32>
      %c0_16 = arith.constant 0 : index
      %c1 = arith.constant 1 : index
      %c0_17 = arith.constant 0 : index
      %23 = vector.load %arg5[%c0_16, %c1, %c0_17] : memref<1x2x16xf32, #tpu.memory_space<vmem>>, vector<1x1x16xf32>
      tpu.vector_store %arg5[%c0_16, %c1, %c0_17], %22 {strides = array<i32>} : memref<1x2x16xf32, #tpu.memory_space<vmem>>, vector<1x1x16xf32>,
    } else {
    }
    %c0_i32_9 = arith.constant 0 : i32
    %12 = arith.cmpi eq, %arg0, %c0_i32_9 : i32
    %13 = arith.extui %12 : i1 to i32
    %c0_i32_10 = arith.constant 0 : i32
    %14 = arith.cmpi ne, %13, %c0_i32_10 : i32
    scf.if %14 {
      %15 = tpu.iota {dimensions = array<i32: 0>} : vector<64x16xi32>
      %c64_i32 = arith.constant 64 : i32
      %16 = arith.muli %arg0, %c64_i32 : i32
      %17 = vector.broadcast %16 : i32 to vector<64x16xi32>
      %18 = arith.addi %15, %17 : vector<64x16xi32>
      %c64_i32_11 = arith.constant 64 : i32
      %19 = vector.broadcast %c64_i32_11 : i32 to vector<64x16xi32>
      %20 = arith.cmpi slt, %18, %19 : vector<64x16xi32>
      %cst_12 = arith.constant 0.000000e+00 : f32
      %21 = vector.broadcast %cst_12 : f32 to vector<64x16xf32>
      %22 = arith.select %20, %7, %21 : vector<64x16xi1>, vector<64x16xf32>
      %cst_13 = arith.constant dense<0.000000e+00> : vector<16xf32>
      %23 = vector.multi_reduction <add>, %22, %cst_13 [0] : vector<64x16xf32> to vector<16xf32>
      %24 = vector.shape_cast %23 : vector<16xf32> to vector<1x16xf32>
      %25 = vector.shape_cast %24 : vector<1x16xf32> to vector<1x1x16xf32>
      %c0_14 = arith.constant 0 : index
      %c0_15 = arith.constant 0 : index
      %c0_16 = arith.constant 0 : index
      %26 = vector.load %arg5[%c0_14, %c0_15, %c0_16] : memref<1x2x16xf32, #tpu.memory_space<vmem>>, vector<1x1x16xf32>
      tpu.vector_store %arg5[%c0_14, %c0_15, %c0_16], %25 {strides = array<i32>} : memref<1x2x16xf32, #tpu.memory_space<vmem>>, vector<1x1x16xf32>,
      %27 = arith.mulf %22, %22 : vector<64x16xf32>
      %cst_17 = arith.constant dense<0.000000e+00> : vector<16xf32>
      %28 = vector.multi_reduction <add>, %27, %cst_17 [0] : vector<64x16xf32> to vector<16xf32>
      %29 = vector.shape_cast %28 : vector<16xf32> to vector<1x16xf32>
      %30 = vector.shape_cast %29 : vector<1x16xf32> to vector<1x1x16xf32>
      %c0_18 = arith.constant 0 : index
      %c1 = arith.constant 1 : index
      %c0_19 = arith.constant 0 : index
      %31 = vector.load %arg5[%c0_18, %c1, %c0_19] : memref<1x2x16xf32, #tpu.memory_space<vmem>>, vector<1x1x16xf32>
      tpu.vector_store %arg5[%c0_18, %c1, %c0_19], %30 {strides = array<i32>} : memref<1x2x16xf32, #tpu.memory_space<vmem>>, vector<1x1x16xf32>,
    } else {
    }
    return
  }
  func.func @transform_0(%arg0: i32) -> (i32, i32) {
    %c0_i32 = arith.constant 0 : i32
    %c0_i32_0 = arith.constant 0 : i32
    return %arg0, %c0_i32 : i32, i32
  }
  func.func @transform_1(%arg0: i32) -> (i32, i32) {
    %c0_i32 = arith.constant 0 : i32
    %c0_i32_0 = arith.constant 0 : i32
    %c0_i32_1 = arith.constant 0 : i32
    return %c0_i32, %c0_i32_0 : i32, i32
  }
  func.func @transform_2(%arg0: i32) -> (i32, i32) {
    %c0_i32 = arith.constant 0 : i32
    %c0_i32_0 = arith.constant 0 : i32
    %c0_i32_1 = arith.constant 0 : i32
    return %c0_i32, %c0_i32_0 : i32, i32
  }
  func.func @transform_3(%arg0: i32) -> (i32, i32) {
    %c0_i32 = arith.constant 0 : i32
    %c0_i32_0 = arith.constant 0 : i32
    return %arg0, %c0_i32 : i32, i32
  }
  func.func @transform_4(%arg0: i32) -> (i32, i32, i32) {
    %c0_i32 = arith.constant 0 : i32
    %c0_i32_0 = arith.constant 0 : i32
    %c0_i32_1 = arith.constant 0 : i32
    return %arg0, %c0_i32, %c0_i32_0 : i32, i32, i32
  }
}

</mosaic_0001>

<bundles_post_ra>
// kernel: tpu_custom_call.1
= control target key start
LH: loop header
LB: loop body
LE: loop exit
PB: predicated region body
PF: predicated region fallthrough
CT: control target
= control target key end

     0   :  { %vm73_vm0 = vcmask 1044480   ;;  %s659_s0 = inlined_call_operand.vmem [shape: f32[64,125], index: 0, kind: input, shape index: {}]   ;;  %s660_s1 = inlined_call_operand.vmem [shape: f32[125,16], index: 1, kind: input, shape index: {}]   ;;  %s661_s2 = inlined_call_operand.vmem [shape: f32[1,16], index: 2, kind: input, shape index: {}]   ;;  %s662_s3 = inlined_call_operand.vmem [shape: f32[64,16], index: 3, kind: output, shape index: {0}]   ;;  %s663_s4 = inlined_call_operand.hbm [shape: f32[1,2,16], index: 4, kind: output, shape index: {1}]  }
   0x1   :  { %v40_v0 = vld [vmem:[%s660_s1 + $0x78] sm:$0x1f]  ;;  %v39_v1 = vld [vmem:[%s660_s1 + $0x70] sm:$0xff]  ;;  %v38_v2 = vld [vmem:[%s660_s1 + $0x68] sm:$0xff] }
   0x2   :  { %400 = vmatprep.subr.msk.mxu0 %vm73_vm0, %v40_v0  ;;  %444 = vmatprep.subr.msk.mxu1 %vm73_vm0, %v40_v0  ;;  %v37_v3 = vld [vmem:[%s660_s1 + $0x60] sm:$0xff]  ;;  %v36_v4 = vld [vmem:[%s660_s1 + $0x58] sm:$0xff]  ;;  %v35_v5 = vld [vmem:[%s660_s1 + $0x50] sm:$0xff] }
   0x3   :  { %401 = vmatpush3.msk.msra.mxu0 %vm73_vm0, %v40_v0  ;;  %460 = vmatpush3.msk.msra.mxu1 %vm73_vm0, %v40_v0 }
   0x4   :  { %402 = vmatprep.subr.mxu0 %v39_v1  ;;  %445 = vmatprep.subr.mxu1 %v39_v1 }
   0x5   :  { %403 = vmatpush3.msra.mxu0 %v39_v1  ;;  %461 = vmatpush3.msra.mxu1 %v39_v1 }
   0x6   :  { %404 = vmatprep.subr.mxu0 %v38_v2  ;;  %446 = vmatprep.subr.mxu1 %v38_v2 }
   0x7   :  { %405 = vmatpush3.msra.mxu0 %v38_v2  ;;  %462 = vmatpush3.msra.mxu1 %v38_v2 }
   0x8   :  { %406 = vmatprep.subr.mxu0 %v37_v3  ;;  %447 = vmatprep.subr.mxu1 %v37_v3 }
   0x9   :  { %407 = vmatpush3.msra.mxu0 %v37_v3  ;;  %463 = vmatpush3.msra.mxu1 %v37_v3 }
   0xa   :  { %10 = vsyncpa [#allocation3], 0  ;;  %408 = vmatprep.subr.mxu0 %v36_v4  ;;  %448 = vmatprep.subr.mxu1 %v36_v4  ;;  %v34_v6 = vld [vmem:[%s660_s1 + $0x48] sm:$0xff]  ;;  %v33_v7 = vld [vmem:[%s660_s1 + $0x40] sm:$0xff]  ;;  %vm48_vm1 = vcmask 1022976   ;;  %vm190_vm2 = vcmask 130048  }
   0xb   :  { %409 = vmatpush3.msra.mxu0 %v36_v4  ;;  %464 = vmatpush3.msra.mxu1 %v36_v4  ;;  %v32_v8 = vld [vmem:[%s660_s1 + $0x38] sm:$0xff]  ;;  %v31_v9 = vld [vmem:[%s660_s1 + $0x30] sm:$0xff]  ;;  %v30_v10 = vld [vmem:[%s660_s1 + $0x28] sm:$0xff]  ;;  %vm316_vm3 = vcmask 122880  }
   0xc   :  { %410 = vmatprep.subr.mxu0 %v35_v5  ;;  %449 = vmatprep.subr.mxu1 %v35_v5  ;;  %v29_v11 = vld [vmem:[%s660_s1 + $0x20] sm:$0xff]  ;;  %v28_v12 = vld [vmem:[%s660_s1 + $0x18] sm:$0xff]  ;;  %v27_v13 = vld [vmem:[%s660_s1 + $0x10] sm:$0xff] }
   0xd   :  { %411 = vmatpush3.msra.mxu0 %v35_v5  ;;  %465 = vmatpush3.msra.mxu1 %v35_v5  ;;  %v17_v14 = vld [vmem:[%s659_s0] sm:$0xff]  ;;  %v26_v15 = vld [vmem:[%s660_s1 + $0x8] sm:$0xff]  ;;  %v19_v18 = vld [vmem:[%s659_s0 + $0x10] sm:$0xff] }
   0xe   :  { %412 = vmatprep.subr.mxu0 %v34_v6  ;;  %450 = vmatprep.subr.mxu1 %v34_v6  ;;  %v25_v16 = vld [vmem:[%s660_s1] sm:$0xff]  ;;  %v18_v17 = vld [vmem:[%s659_s0 + $0x8] sm:$0xff]  ;;  %v23_v21 = vld [vmem:[%s659_s0 + $0x30] sm:$0xff] }
   0xf   :  { %413 = vmatpush3.msra.mxu0 %v34_v6  ;;  %466 = vmatpush3.msra.mxu1 %v34_v6  ;;  %v21_v19 = vld [vmem:[%s659_s0 + $0x20] sm:$0xff]  ;;  %v22_v20 = vld [vmem:[%s659_s0 + $0x28] sm:$0xff]  ;;  %v20_v22 = vld [vmem:[%s659_s0 + $0x18] sm:$0xff] }
  0x10   :  { %414 = vmatprep.subr.mxu0 %v33_v7  ;;  %451 = vmatprep.subr.mxu1 %v33_v7  ;;  %v24_v23 = vld [vmem:[%s659_s0 + $0x38] sm:$0xff]  ;;  %v366_v24 = vld [vmem:[%s661_s2] ss:$0 sm:$0xff] }
  0x11   :  { %415 = vmatpush3.msra.mxu0 %v33_v7  ;;  %467 = vmatpush3.msra.mxu1 %v33_v7 }
  0x12   :  { %416 = vmatprep.subr.mxu0 %v32_v8  ;;  %452 = vmatprep.subr.mxu1 %v32_v8 }
  0x13   :  { %417 = vmatpush3.msra.mxu0 %v32_v8  ;;  %468 = vmatpush3.msra.mxu1 %v32_v8 }
  0x14   :  { %418 = vmatprep.subr.mxu0 %v31_v9  ;;  %453 = vmatprep.subr.mxu1 %v31_v9 }
  0x15   :  { %419 = vmatpush3.msra.mxu0 %v31_v9  ;;  %469 = vmatpush3.msra.mxu1 %v31_v9 }
  0x16   :  { %420 = vmatprep.subr.mxu0 %v30_v10  ;;  %454 = vmatprep.subr.mxu1 %v30_v10 }
  0x17   :  { %421 = vmatpush3.msra.mxu0 %v30_v10  ;;  %470 = vmatpush3.msra.mxu1 %v30_v10 }
  0x18   :  { %422 = vmatprep.subr.mxu0 %v29_v11  ;;  %455 = vmatprep.subr.mxu1 %v29_v11 }
  0x19   :  { %423 = vmatpush3.msra.mxu0 %v29_v11  ;;  %471 = vmatpush3.msra.mxu1 %v29_v11 }
  0x1a   :  { %424 = vmatprep.subr.mxu0 %v28_v12  ;;  %456 = vmatprep.subr.mxu1 %v28_v12 }
  0x1b   :  { %425 = vmatpush3.msra.mxu0 %v28_v12  ;;  %472 = vmatpush3.msra.mxu1 %v28_v12 }
  0x1c   :  { %426 = vmatprep.subr.mxu0 %v27_v13  ;;  %432 = vmatprep.mubr.msk.f32.mxu0 %vm48_vm1, %v17_v14 }
  0x1d   :  { %427 = vmatpush3.msra.mxu0 %v27_v13  ;;  %457 = vmatprep.subr.mxu1 %v27_v13 }
  0x1e   :  { %428 = vmatprep.subr.mxu0 %v26_v15  ;;  %473 = vmatpush3.msra.mxu1 %v27_v13 }
  0x1f   :  { %429 = vmatpush3.msra.mxu0 %v26_v15  ;;  %458 = vmatprep.subr.mxu1 %v26_v15 }
  0x20   :  { %430 = vmatprep.subr.mxu0 %v25_v16  ;;  %474 = vmatpush3.msra.mxu1 %v26_v15 }
  0x21   :  { %431 = vmatpush3.msra.mxu0 %v25_v16  ;;  %459 = vmatprep.subr.mxu1 %v25_v16 }
  0x22   :  { %433 = vmatmul.mubr.msk.f32.vlgmr.msra.gmra.mxu0 %vm48_vm1, %v18_v17  ;;  %475 = vmatpush3.msra.mxu1 %v25_v16 }
  0x23   :  { %435 = vmatprep.mubr.msk.f32.mxu0 %vm48_vm1, %v19_v18  ;;  %438 = vmatprep.mubr.msk.f32.mxu1 %vm48_vm1, %v21_v19 }
  0x24   :  { %439 = vmatmul.mubr.msk.f32.vlgmr.msra.gmra.mxu1 %vm48_vm1, %v22_v20 }
  0x25   :  { %441 = vmatprep.mubr.msk.f32.mxu1 %vm48_vm1, %v23_v21 }
  0x26   :  { %436 = vmatmul.mubr.msk.f32.gmra.mxu0 %vm48_vm1, %v20_v22 }
  0x28   :  { %442 = vmatmul.mubr.msk.f32.gmra.mxu1 %vm48_vm1, %v24_v23 }
  0xe2   :  { %v434_v25 = vpop.f32.mrf.mxu0 }
  0xe3   :  { %v149_v26 = vadd.f32 %v434_v25, %v366_v24 }
  0xe4   :  { %v143_v27 = vpop.f32.mrf.mxu0  ;;  %v440_v28 = vpop.f32.mrf.mxu1 }
  0xe5   :  { %v183_v29 = vmax.f32 %v149_v26, 0.0  ;;  %v144_v30 = vadd.f32 %v366_v24, %v143_v27  ;;  %v169_v31 = vadd.f32 %v440_v28, %v366_v24 }
  0xe6   :  { %v437_v32 = vpop.f32.mrf.mxu0  ;;  %v163_v33 = vpop.f32.mrf.mxu1 }
  0xe7   :  { %192 = vst.msk [vmem:[%s662_s3 + $0x8] sm:$0xff] %vm190_vm2, %v183_v29  ;;  %v182_v34 = vmax.f32 %v144_v30, 0.0  ;;  %v159_v35 = vadd.f32 %v437_v32, %v366_v24  ;;  %v187_v37 = vmax.f32 %v169_v31, 0.0  ;;  %v164_v38 = vadd.f32 %v366_v24, %v163_v33 }
  0xe8   :  { %v153_v36 = vpop.f32.mrf.mxu0  ;;  %v443_v39 = vpop.f32.mrf.mxu1  ;;  %v319_v40 = vmul.f32 %v183_v29, %v183_v29  ;;  %v296_v47 = vsel %vm190_vm2, %v183_v29, 0.0 }
  0xe9   :  { %191 = vst.msk [vmem:[%s662_s3] sm:$0xff] %vm190_vm2, %v182_v34  ;;  %v318_v41 = vmul.f32 %v182_v34, %v182_v34  ;;  %v185_v42 = vmax.f32 %v159_v35, 0.0  ;;  %v295_v43 = vsel %vm190_vm2, %v182_v34, 0.0  ;;  %v154_v44 = vadd.f32 %v366_v24, %v153_v36  ;;  %196 = vst.msk [vmem:[%s662_s3 + $0x28] sm:$0xff] %vm190_vm2, %v187_v37 }
  0xea   :  { %v173_v45 = vpop.f32.mrf.mxu1  ;;  %v186_v46 = vmax.f32 %v164_v38, 0.0  ;;  %v179_v50 = vadd.f32 %v443_v39, %v366_v24  ;;  %v327_v51 = vsel %vm190_vm2, %v319_v40, 0.0  ;;  %v297_v52 = vadd.f32 %v296_v47, %v295_v43 }
  0xeb   :  { %194 = vst.msk [vmem:[%s662_s3 + $0x18] sm:$0xff] %vm190_vm2, %v185_v42  ;;  %v326_v48 = vsel %vm190_vm2, %v318_v41, 0.0  ;;  %v184_v49 = vmax.f32 %v154_v44, 0.0  ;;  %v174_v53 = vadd.f32 %v366_v24, %v173_v45  ;;  %v321_v54 = vmul.f32 %v185_v42, %v185_v42 }
  0xec   :  { %195 = vst.msk [vmem:[%s662_s3 + $0x20] sm:$0xff] %vm190_vm2, %v186_v46  ;;  %v189_v57 = vmax.f32 %v179_v50, 0.0  ;;  %v328_v58 = vadd.f32 %v327_v51, %v326_v48  ;;  %v300_v61 = vsel %vm190_vm2, %v185_v42, 0.0  ;;  %v322_v63 = vmul.f32 %v186_v46, %v186_v46 }
  0xed   :  { %193 = vst.msk [vmem:[%s662_s3 + $0x10] sm:$0xff] %vm190_vm2, %v184_v49  ;;  %v298_v55 = vsel %vm190_vm2, %v184_v49, 0.0  ;;  %v320_v56 = vmul.f32 %v184_v49, %v184_v49  ;;  %v188_v60 = vmax.f32 %v174_v53, 0.0  ;;  %v331_v2 = vsel %vm190_vm2, %v321_v54, 0.0 }
  0xee   :  { %v299_v59 = vadd.f32 %v298_v55, %v297_v52  ;;  %198 = vst.msk [vmem:[%s662_s3 + $0x38] sm:$0xff] %vm190_vm2, %v189_v57  ;;  %v323_v3 = vmul.f32 %v187_v37, %v187_v37  ;;  %v302_v4 = vsel %vm190_vm2, %v186_v46, 0.0  ;;  %v304_v7 = vsel %vm190_vm2, %v187_v37, 0.0 }
  0xef   :  { %v329_v62 = vsel %vm190_vm2, %v320_v56, 0.0  ;;  %197 = vst.msk [vmem:[%s662_s3 + $0x30] sm:$0xff] %vm190_vm2, %v188_v60  ;;  %v333_v8 = vsel %vm190_vm2, %v322_v63, 0.0  ;;  %v324_v9 = vmul.f32 %v188_v60, %v188_v60  ;;  %v325_v13 = vmul.f32 %v189_v57, %v189_v57  ;;  %s499_s3 = smov [#allocation2]  }
  0xf0   :  { %v330_v0 = vadd.f32 %v329_v62, %v328_v58  ;;  %v301_v1 = vadd.f32 %v300_v61, %v299_v59  ;;  %v335_v12 = vsel %vm190_vm2, %v323_v3, 0.0  ;;  %v306_v14 = vsel %vm190_vm2, %v188_v60, 0.0  ;;  %s356_s26 = sshll.u32 %s499_s3, 4  ;;  %s357_s26 = int_to_ptr.vmem [resolvable:$true] %s356_s26 }
  0xf1   :  { %v308_v17 = vsel %vm190_vm2, %v189_v57, 0.0  ;;  %v337_v18 = vsel %vm190_vm2, %v324_v9, 0.0  ;;  %v339_v21 = vsel %vm190_vm2, %v325_v13, 0.0  ;;  %s477_s27 = scalar_lea.vmem %s357_s26, 32  ;;  %p482_p1 = scmp.lt.s32.totalorder %s357_s26, %s357_s26 }
  0xf2   :  { %v303_v5 = vadd.f32 %v302_v4, %v301_v1  ;;  %v332_v6 = vadd.f32 %v331_v2, %v330_v0  ;;  %p478_p0 = scmp.ne.s32.totalorder %s357_s26, %s477_s27  ;;  %p483_p2 = scmp.lt.s32.totalorder %s477_s27, %s477_s27 }
  0xf4   :  { %v334_v10 = vadd.f32 %v333_v8, %v332_v6  ;;  %v305_v11 = vadd.f32 %v304_v7, %v303_v5  ;;  %p484_p3 = por %p483_p2, %p482_p1 }
  0xf6   :  { %v307_v15 = vadd.f32 %v306_v14, %v305_v11  ;;  %v336_v16 = vadd.f32 %v335_v12, %v334_v10  ;;  %p485_p4 = pnand %p484_p3, %p478_p0 }
  0xf8   :  { %v309_v19 = vadd.f32 %v308_v17, %v307_v15  ;;  %v338_v20 = vadd.f32 %v337_v18, %v336_v16 }
  0xfa   :  { %v310_v22 = vrot.slane %v309_v19, 4  ;;  %v340_v23 = vadd.f32 %v339_v21, %v338_v20 }
  0xfc   :  { %v311_v24 = vadd.f32 %v310_v22, %v309_v19  ;;  %v341_v25 = vrot.slane %v340_v23, 4 }
  0xfe   :  { %v312_v26 = vrot.slane %v311_v24, 2  ;;  %v342_v27 = vadd.f32 %v341_v25, %v340_v23 }
 0x100   :  { %v313_v28 = vadd.f32 %v312_v26, %v311_v24  ;;  %v343_v29 = vrot.slane %v342_v27, 2 }
 0x102   :  { %v314_v30 = vrot.slane %v313_v28, 1  ;;  %v344_v31 = vadd.f32 %v343_v29, %v342_v27 }
 0x104   :  { %v315_v32 = vadd.f32 %v314_v30, %v313_v28  ;;  %v345_v33 = vrot.slane %v344_v31, 1 }
 0x106   :  { %317 = vst.msk [vmem:[#allocation2] sm:$0x1] %vm316_vm3, %v315_v32  ;;  %v346_v34 = vadd.f32 %v345_v33, %v344_v31 }
 0x108   :  { %347 = vst.msk [vmem:[#allocation2 + $0x1] sm:$0x1] %vm316_vm3, %v346_v34 }
 0x109   :  { %488 = shalt.err (!%p485_p4)
}
 0x10a   :  { %359 = dma.vmem_to_hbm [thread:$0]  %s357_s26, 32, %s663_s4, [#allocation3]  }
 0x10b   :  { %497 = dma.done.wait [#allocation3], 32  }
 0x10c   :  { %498 = vsyncadd [#allocation3], 4294967264 }
 0x10d   :  { %365 = vsyncpa [#allocation3], 1 }

</bundles_post_ra>
